<compile_context>
chip_gen: v7x
topology: tpu7x:2x2x1
jax: 0.10.0
libtpu: 0.0.40
codegen_flags: <defaults>
</compile_context>

<pallas_src>
import functools
import math

import jax
import jax.numpy as jnp
from jax.experimental import pallas as pl
from jax.experimental.pallas import tpu as pltpu


NEG_INF = -1e30  # finite mask value: exp(NEG_INF - m) underflows to 0, never produces NaN


def _pick_tile(total, target):
    """Largest tile <= target that divides `total` and is a multiple of 8 (else `total`)."""
    if total <= target:
        return total
    t = (target // 8) * 8
    while t >= 8:
        if total % t == 0:
            return t
        t -= 8
    return total


# ---------------------------------------------------------------------------
# Stage 1: fused QKV projection, tiled over (batch, token-tile).
# ---------------------------------------------------------------------------
def qkv_proj_kernel(x_ref, w_ref, o_ref):
    # x_ref: (1, tq, d_in)  w_ref: (d_in, 3*d_out)  -> o_ref: (1, tq, 3*d_out)
    o_ref[0] = jnp.dot(
        x_ref[0], w_ref[...], preferred_element_type=jnp.float32
    ).astype(o_ref.dtype)


# ---------------------------------------------------------------------------
# Stage 2: causal flash attention + output projection (+ bias), all heads per grid step.
# ---------------------------------------------------------------------------
def flash_attn_proj_kernel(q_ref, k_ref, v_ref, wp_ref, b_ref, o_ref,
                           m_sc, l_sc, acc_sc, *, tq, tkv, num_heads):
    qi = pl.program_id(1)
    ki = pl.program_id(2)
    nk = pl.num_programs(2)
    q_start = qi * tq
    k_start = ki * tkv

    @pl.when(ki == 0)
    def _init():
        m_sc[...] = jnp.full_like(m_sc, NEG_INF)
        l_sc[...] = jnp.zeros_like(l_sc)
        acc_sc[...] = jnp.zeros_like(acc_sc)

    # Skip KV tiles entirely above the causal diagonal (halves attention FLOPs).
    @pl.when(k_start <= q_start + tq - 1)
    def _compute():
        q = q_ref[0]          # (H, tq,  hd)  bf16 (scale already folded into Wq)
        k = k_ref[0]          # (H, tkv, hd)  bf16
        v = v_ref[0]          # (H, tkv, hd)  bf16

        # Batched over heads; contracts last dims directly (no explicit .T / relayout).
        s = jnp.einsum("hqd,hkd->hqk", q, k,
                       preferred_element_type=jnp.float32)       # (H, tq, tkv) f32

        # Causal mask from tile offsets only (no (T, T) iota).
        row = q_start + jax.lax.broadcasted_iota(jnp.int32, (tq, tkv), 0)
        col = k_start + jax.lax.broadcasted_iota(jnp.int32, (tq, tkv), 1)
        s = jnp.where((row >= col)[None, :, :], s, NEG_INF)

        m_prev = m_sc[...]                                        # (H, tq, 1)
        m_new = jnp.maximum(m_prev, s.max(axis=-1, keepdims=True))
        alpha = jnp.exp(m_prev - m_new)
        p = jnp.exp(s - m_new)
        l_sc[...] = alpha * l_sc[...] + p.sum(axis=-1, keepdims=True)
        acc_sc[...] = alpha * acc_sc[...] + jnp.einsum(
            "hqk,hkd->hqd", p.astype(v.dtype), v,
            preferred_element_type=jnp.float32)                   # (H, tq, hd) f32
        m_sc[...] = m_new

    @pl.when(ki == nk - 1)
    def _finalize():
        d_out = o_ref.shape[-1]
        inv_l = pl.reciprocal(l_sc[...], approx=True)             # EUP, ~free
        ctx = acc_sc[...] * inv_l                                 # (H, tq, hd) f32
        # Accumulate the output projection per head: no head concat, lane-dense stores.
        # TODO(synk): at head_dim << 128 (demo config hd=8) per-head MXU GEMMs are narrow;
        #             realistic configs with head_dim >= 128 use the MXU fully.
        out = jnp.zeros((tq, d_out), jnp.float32)
        for h in range(num_heads):                                # static, small unroll
            out = out + jnp.dot(ctx[h].astype(wp_ref.dtype), wp_ref[h],
                                preferred_element_type=jnp.float32)
        out = out + b_ref[...]                                    # bias only in epilogue
        o_ref[0] = out.astype(o_ref.dtype)


@functools.partial(jax.jit,
                   static_argnames=("num_heads", "q_tile", "kv_tile", "compute_dtype"))
def multi_head_self_attention(x, w_qkv, w_proj, b_proj, num_heads,
                              *, q_tile=256, kv_tile=512,
                              compute_dtype=jnp.bfloat16):
    """x: (B, T, d_in); w_qkv: (d_in, 3*d_out); w_proj: (d_out, d_out); b_proj: (d_out,)."""
    B, T, d_in = x.shape
    three_d_out = w_qkv.shape[1]
    d_out = three_d_out // 3
    assert d_out % num_heads == 0, "d_out must be divisible by num_heads"
    hd = d_out // num_heads
    out_dtype = x.dtype

    # Fold 1/sqrt(head_dim) into the Q columns of Wqkv (host side) -> no (T,T) score scaling.
    scale = 1.0 / math.sqrt(hd)
    w_qkv_s = jnp.concatenate([w_qkv[:, :d_out] * scale, w_qkv[:, d_out:]], axis=1)

    # bf16 MXU operands, f32 accumulation in-kernel.
    x_c = x.astype(compute_dtype)
    w_qkv_c = w_qkv_s.astype(compute_dtype)
    w_proj_c = w_proj.reshape(num_heads, hd, d_out).astype(compute_dtype)
    b_proj_2d = b_proj.reshape(1, d_out).astype(jnp.float32)

    # Tile budget: 32 MiB scoped VMEM works on v5e/v6e/v7x (v7x has 64 MiB physical).
    vmem_limit = 32 * 1024 * 1024

    # --- Stage 1: QKV projection --------------------------------------------------------
    tqp = _pick_tile(T, 512)
    qkv = pl.pallas_call(
        qkv_proj_kernel,
        out_shape=jax.ShapeDtypeStruct((B, T, three_d_out), compute_dtype),
        grid=(B, T // tqp),
        in_specs=[
            pl.BlockSpec((1, tqp, d_in), lambda b, i: (b, i, 0)),
            pl.BlockSpec((d_in, three_d_out), lambda b, i: (0, 0)),   # weights resident
        ],
        out_specs=pl.BlockSpec((1, tqp, three_d_out), lambda b, i: (b, i, 0)),
        compiler_params=pltpu.CompilerParams(
            dimension_semantics=("parallel", "parallel"),
            vmem_limit_bytes=vmem_limit),
    )(x_c, w_qkv_c)

    # Wrapper-side layout plumbing: split into per-head q/k/v of shape (B, H, T, hd).
    qkv = qkv.reshape(B, T, 3, num_heads, hd).transpose(2, 0, 3, 1, 4)
    q, k, v = qkv[0], qkv[1], qkv[2]

    # --- Stage 2: flash attention + output projection ------------------------------------
    tq = _pick_tile(T, q_tile)
    tkv = _pick_tile(T, kv_tile)
    nq = T // tq
    nk = T // tkv

    kernel = functools.partial(flash_attn_proj_kernel,
                               tq=tq, tkv=tkv, num_heads=num_heads)

    out = pl.pallas_call(
        kernel,
        out_shape=jax.ShapeDtypeStruct((B, T, d_out), out_dtype),
        grid=(B, nq, nk),
        in_specs=[
            pl.BlockSpec((1, num_heads, tq, hd), lambda b, qi, ki: (b, 0, qi, 0)),
            pl.BlockSpec((1, num_heads, tkv, hd), lambda b, qi, ki: (b, 0, ki, 0)),
            pl.BlockSpec((1, num_heads, tkv, hd), lambda b, qi, ki: (b, 0, ki, 0)),
            pl.BlockSpec((num_heads, hd, d_out), lambda b, qi, ki: (0, 0, 0)),  # resident
            pl.BlockSpec((1, d_out), lambda b, qi, ki: (0, 0)),                 # bias
        ],
        out_specs=pl.BlockSpec((1, tq, d_out), lambda b, qi, ki: (b, qi, 0)),
        scratch_shapes=[
            pltpu.VMEM((num_heads, tq, 1), jnp.float32),    # m (running max)
            pltpu.VMEM((num_heads, tq, 1), jnp.float32),    # l (running denom)
            pltpu.VMEM((num_heads, tq, hd), jnp.float32),   # acc (unnormalized ctx)
        ],
        compiler_params=pltpu.CompilerParams(
            dimension_semantics=("parallel", "parallel", "arbitrary"),
            vmem_limit_bytes=vmem_limit),
    )(q, k, v, w_proj_c, b_proj_2d)

    return out


def _reference(x, w_qkv, w_proj, b_proj, num_heads):
    """Pure-JAX f32 reference mirroring the PyTorch forward (attn_mask=None -> causal)."""
    B, T, d_in = x.shape
    d_out = w_proj.shape[1]
    hd = d_out // num_heads
    qkv = jnp.einsum("btd,de->bte", x, w_qkv)
    qkv = qkv.reshape(B, T, 3, num_heads, hd).transpose(2, 0, 3, 1, 4)
    q, k, v = qkv[0], qkv[1], qkv[2]                         # (B, H, T, hd)
    s = jnp.einsum("bhqd,bhkd->bhqk", q, k) / math.sqrt(hd)
    causal = jnp.tril(jnp.ones((T, T), dtype=bool))
    s = jnp.where(causal, s, -jnp.inf)
    p = jax.nn.softmax(s, axis=-1)
    ctx = jnp.einsum("bhqk,bhkd->bhqd", p, v)
    ctx = ctx.transpose(0, 2, 1, 3).reshape(B, T, d_out)
    return jnp.einsum("btd,de->bte", ctx, w_proj) + b_proj


if __name__ == "__main__":
    # Small shapes consistent with the module: B=2, T=8, d_in=32, d_out=32, heads=4, head_dim=8.
    B, T, d_in, d_out, num_heads = 2, 8, 32, 32, 4

    key = jax.random.PRNGKey(0)
    kx, kq, kp, kb = jax.random.split(key, 4)
    x = jax.random.normal(kx, (B, T, d_in), dtype=jnp.float32)
    # qkv Linear has qkv_bias=False by default; proj Linear has bias.
    w_qkv = jax.random.normal(kq, (d_in, 3 * d_out), dtype=jnp.float32) * (1.0 / math.sqrt(d_in))
    w_proj = jax.random.normal(kp, (d_out, d_out), dtype=jnp.float32) * (1.0 / math.sqrt(d_out))
    b_proj = jax.random.normal(kb, (d_out,), dtype=jnp.float32) * 0.01

    out = multi_head_self_attention(x, w_qkv, w_proj, b_proj, num_heads)
    out = jax.block_until_ready(out)

    ref = _reference(x, w_qkv, w_proj, b_proj, num_heads)
    assert out.shape == (B, T, d_out)
    max_err = float(jnp.max(jnp.abs(out - ref)))
    # bf16 MXU operands with f32 accumulation -> small numeric deviation vs f32 reference.
    assert jnp.allclose(out, ref, atol=5e-2, rtol=5e-2), f"mismatch vs reference (max|err|={max_err})"

    # TODO(synk): explicit (non-None) attn_mask path and training-mode dropout are not implemented
    # (module default forward uses attn_mask=None -> causal; dropout inactive in eval).
    print("KERNEL_OK")
</pallas_src>

<mosaic_0001>
module attributes {stable_mosaic.version = 11 : i64} {
  func.func @qkv_proj_kernel(%arg0: i32, %arg1: i32, %arg2: memref<1x8x32xbf16, #tpu.memory_space<vmem>>, %arg3: memref<32x96xbf16, #tpu.memory_space<vmem>>, %arg4: memref<1x8x96xbf16, #tpu.memory_space<vmem>>) attributes {dimension_semantics = [#tpu.dimension_semantics<parallel>, #tpu.dimension_semantics<parallel>], iteration_bounds = array<i64: 2, 1>, scalar_prefetch = 0 : i64, scratch_operands = 0 : i64, tpu.core_type = #tpu.core_type<tc>, window_params = [{transform_indices = @transform_0, window_bounds = array<i64: 1, 8, 32>}, {pipeline_mode = #tpu.pipeline_mode<synchronous>, transform_indices = @transform_1, window_bounds = array<i64: 32, 96>}, {transform_indices = @transform_2, window_bounds = array<i64: 1, 8, 96>}]} {
    %c0 = arith.constant 0 : index
    %c0_0 = arith.constant 0 : index
    %c0_1 = arith.constant 0 : index
    %0 = vector.load %arg2[%c0, %c0_0, %c0_1] : memref<1x8x32xbf16, #tpu.memory_space<vmem>>, vector<1x8x32xbf16>
    %1 = vector.shape_cast %0 : vector<1x8x32xbf16> to vector<8x32xbf16>
    %c0_2 = arith.constant 0 : index
    %c0_3 = arith.constant 0 : index
    %2 = vector.load %arg3[%c0_2, %c0_3] : memref<32x96xbf16, #tpu.memory_space<vmem>>, vector<32x96xbf16>
    %cst = arith.constant dense<0.000000e+00> : vector<8x96xf32>
    %3 = tpu.matmul %1, %2, %cst {dimension_numbers = #tpu.dot_dimension_numbers<[1], [0], [0], [1], [0, 0, 1, 1], [], []>} : vector<8x32xbf16>, vector<32x96xbf16>, vector<8x96xf32> -> vector<8x96xf32>
    %4 = arith.truncf %3 : vector<8x96xf32> to vector<8x96xbf16>
    %c0_4 = arith.constant 0 : index
    %c0_5 = arith.constant 0 : index
    %c0_6 = arith.constant 0 : index
    %5 = vector.load %arg4[%c0_4, %c0_5, %c0_6] : memref<1x8x96xbf16, #tpu.memory_space<vmem>>, vector<1x8x96xbf16>
    %6 = vector.shape_cast %5 : vector<1x8x96xbf16> to vector<8x96xbf16>
    %7 = vector.shape_cast %4 : vector<8x96xbf16> to vector<1x8x96xbf16>
    tpu.vector_store %arg4[%c0_4, %c0_5, %c0_6], %7 {strides = array<i32>} : memref<1x8x96xbf16, #tpu.memory_space<vmem>>, vector<1x8x96xbf16>,
    return
  }
  func.func @transform_0(%arg0: i32, %arg1: i32) -> (i32, i32, i32) {
    %c0_i32 = arith.constant 0 : i32
    %c0_i32_0 = arith.constant 0 : i32
    return %arg0, %arg1, %c0_i32 : i32, i32, i32
  }
  func.func @transform_1(%arg0: i32, %arg1: i32) -> (i32, i32) {
    %c0_i32 = arith.constant 0 : i32
    %c0_i32_0 = arith.constant 0 : i32
    %c0_i32_1 = arith.constant 0 : i32
    return %c0_i32, %c0_i32_0 : i32, i32
  }
  func.func @transform_2(%arg0: i32, %arg1: i32) -> (i32, i32, i32) {
    %c0_i32 = arith.constant 0 : i32
    %c0_i32_0 = arith.constant 0 : i32
    return %arg0, %arg1, %c0_i32 : i32, i32, i32
  }
}

module attributes {stable_mosaic.version = 11 : i64} {
  func.func @flash_attn_proj_kernel(%arg0: i32, %arg1: i32, %arg2: i32, %arg3: memref<1x4x8x8xbf16, #tpu.memory_space<vmem>>, %arg4: memref<1x4x8x8xbf16, #tpu.memory_space<vmem>>, %arg5: memref<1x4x8x8xbf16, #tpu.memory_space<vmem>>, %arg6: memref<4x8x32xbf16, #tpu.memory_space<vmem>>, %arg7: memref<1x32xf32, #tpu.memory_space<vmem>>, %arg8: memref<1x8x32xf32, #tpu.memory_space<vmem>>, %arg9: memref<4x8x1xf32, #tpu.memory_space<vmem>>, %arg10: memref<4x8x1xf32, #tpu.memory_space<vmem>>, %arg11: memref<4x8x8xf32, #tpu.memory_space<vmem>>) attributes {dimension_semantics = [#tpu.dimension_semantics<parallel>, #tpu.dimension_semantics<parallel>, #tpu.dimension_semantics<arbitrary>], iteration_bounds = array<i64: 2, 1, 1>, scalar_prefetch = 0 : i64, scratch_operands = 3 : i64, tpu.core_type = #tpu.core_type<tc>, window_params = [{transform_indices = @transform_0, window_bounds = array<i64: 1, 4, 8, 8>}, {transform_indices = @transform_1, window_bounds = array<i64: 1, 4, 8, 8>}, {transform_indices = @transform_2, window_bounds = array<i64: 1, 4, 8, 8>}, {pipeline_mode = #tpu.pipeline_mode<synchronous>, transform_indices = @transform_3, window_bounds = array<i64: 4, 8, 32>}, {pipeline_mode = #tpu.pipeline_mode<synchronous>, transform_indices = @transform_4, window_bounds = array<i64: 1, 32>}, {transform_indices = @transform_5, window_bounds = array<i64: 1, 8, 32>}]} {
    %c8_i32 = arith.constant 8 : i32
    %0 = arith.muli %arg1, %c8_i32 : i32
    %c8_i32_0 = arith.constant 8 : i32
    %1 = arith.muli %arg2, %c8_i32_0 : i32
    %c0_i32 = arith.constant 0 : i32
    %2 = arith.cmpi eq, %arg2, %c0_i32 : i32
    %3 = arith.extui %2 : i1 to i32
    %c0_i32_1 = arith.constant 0 : i32
    %4 = arith.cmpi ne, %3, %c0_i32_1 : i32
    scf.if %4 {
      %cst = arith.constant -1.000000e+30 : f32
      %13 = vector.broadcast %cst : f32 to vector<4x8x1xf32>
      %c0 = arith.constant 0 : index
      %c0_6 = arith.constant 0 : index
      %c0_7 = arith.constant 0 : index
      %14 = vector.load %arg9[%c0, %c0_6, %c0_7] : memref<4x8x1xf32, #tpu.memory_space<vmem>>, vector<4x8x1xf32>
      tpu.vector_store %arg9[%c0, %c0_6, %c0_7], %13 {strides = array<i32>} : memref<4x8x1xf32, #tpu.memory_space<vmem>>, vector<4x8x1xf32>,
      %cst_8 = arith.constant 0.000000e+00 : f32
      %15 = vector.broadcast %cst_8 : f32 to vector<4x8x1xf32>
      %c0_9 = arith.constant 0 : index
      %c0_10 = arith.constant 0 : index
      %c0_11 = arith.constant 0 : index
      %16 = vector.load %arg10[%c0_9, %c0_10, %c0_11] : memref<4x8x1xf32, #tpu.memory_space<vmem>>, vector<4x8x1xf32>
      tpu.vector_store %arg10[%c0_9, %c0_10, %c0_11], %15 {strides = array<i32>} : memref<4x8x1xf32, #tpu.memory_space<vmem>>, vector<4x8x1xf32>,
      %cst_12 = arith.constant 0.000000e+00 : f32
      %17 = vector.broadcast %cst_12 : f32 to vector<4x8x8xf32>
      %c0_13 = arith.constant 0 : index
      %c0_14 = arith.constant 0 : index
      %c0_15 = arith.constant 0 : index
      %18 = vector.load %arg11[%c0_13, %c0_14, %c0_15] : memref<4x8x8xf32, #tpu.memory_space<vmem>>, vector<4x8x8xf32>
      tpu.vector_store %arg11[%c0_13, %c0_14, %c0_15], %17 {strides = array<i32>} : memref<4x8x8xf32, #tpu.memory_space<vmem>>, vector<4x8x8xf32>,
    } else {
    }
    %c8_i32_2 = arith.constant 8 : i32
    %5 = arith.addi %0, %c8_i32_2 : i32
    %c1_i32 = arith.constant 1 : i32
    %6 = arith.subi %5, %c1_i32 : i32
    %7 = arith.cmpi sle, %1, %6 : i32
    %8 = arith.extui %7 : i1 to i32
    %c0_i32_3 = arith.constant 0 : i32
    %9 = arith.cmpi ne, %8, %c0_i32_3 : i32
    scf.if %9 {
      %c0 = arith.constant 0 : index
      %c0_6 = arith.constant 0 : index
      %c0_7 = arith.constant 0 : index
      %c0_8 = arith.constant 0 : index
      %13 = vector.load %arg3[%c0, %c0_6, %c0_7, %c0_8] : memref<1x4x8x8xbf16, #tpu.memory_space<vmem>>, vector<1x4x8x8xbf16>
      %14 = vector.shape_cast %13 : vector<1x4x8x8xbf16> to vector<4x8x8xbf16>
      %c0_9 = arith.constant 0 : index
      %c0_10 = arith.constant 0 : index
      %c0_11 = arith.constant 0 : index
      %c0_12 = arith.constant 0 : index
      %15 = vector.load %arg4[%c0_9, %c0_10, %c0_11, %c0_12] : memref<1x4x8x8xbf16, #tpu.memory_space<vmem>>, vector<1x4x8x8xbf16>
      %16 = vector.shape_cast %15 : vector<1x4x8x8xbf16> to vector<4x8x8xbf16>
      %c0_13 = arith.constant 0 : index
      %c0_14 = arith.constant 0 : index
      %c0_15 = arith.constant 0 : index
      %c0_16 = arith.constant 0 : index
      %17 = vector.load %arg5[%c0_13, %c0_14, %c0_15, %c0_16] : memref<1x4x8x8xbf16, #tpu.memory_space<vmem>>, vector<1x4x8x8xbf16>
      %18 = vector.shape_cast %17 : vector<1x4x8x8xbf16> to vector<4x8x8xbf16>
      "tpu.trace_start"() <{level = 10 : i32, message = "hqd,hkd->hqk"}> : () -> ()
      %cst = arith.constant dense<0.000000e+00> : vector<4x8x8xf32>
      %19 = tpu.matmul %14, %16, %cst {dimension_numbers = #tpu.dot_dimension_numbers<[2], [2], [1], [1], [0, 0, 0, 1, 1, 1], [0], [0]>} : vector<4x8x8xbf16>, vector<4x8x8xbf16>, vector<4x8x8xf32> -> vector<4x8x8xf32>
      "tpu.trace_stop"() : () -> ()
      %20 = tpu.iota {dimensions = array<i32: 0>} : vector<8x8xi32>
      %21 = vector.broadcast %0 : i32 to vector<8x8xi32>
      %22 = arith.addi %21, %20 : vector<8x8xi32>
      %23 = tpu.iota {dimensions = array<i32: 1>} : vector<8x8xi32>
      %24 = vector.broadcast %1 : i32 to vector<8x8xi32>
      %25 = arith.addi %24, %23 : vector<8x8xi32>
      %26 = arith.cmpi sge, %22, %25 : vector<8x8xi32>
      %27 = vector.shape_cast %26 : vector<8x8xi1> to vector<1x8x8xi1>
      %cst_17 = arith.constant -1.000000e+30 : f32
      %28 = vector.shape_cast %27 : vector<1x8x8xi1> to vector<1x8x8xi1>
      %29 = vector.broadcast %28 : vector<1x8x8xi1> to vector<4x8x8xi1>
      %30 = vector.broadcast %cst_17 : f32 to vector<4x8x8xf32>
      %31 = arith.select %29, %19, %30 : vector<4x8x8xi1>, vector<4x8x8xf32>
      %c0_18 = arith.constant 0 : index
      %c0_19 = arith.constant 0 : index
      %c0_20 = arith.constant 0 : index
      %32 = vector.load %arg9[%c0_18, %c0_19, %c0_20] : memref<4x8x1xf32, #tpu.memory_space<vmem>>, vector<4x8x1xf32>
      %cst_21 = arith.constant dense<0xFF800000> : vector<4x8xf32>
      %33 = vector.multi_reduction <maximumf>, %31, %cst_21 [2] : vector<4x8x8xf32> to vector<4x8xf32>
      %34 = vector.shape_cast %33 : vector<4x8xf32> to vector<4x8x1xf32>
      %35 = arith.maximumf %32, %34 : vector<4x8x1xf32>
      %36 = arith.subf %32, %35 : vector<4x8x1xf32>
      %37 = math.exp %36 : vector<4x8x1xf32>
      %38 = vector.broadcast %35 : vector<4x8x1xf32> to vector<4x8x8xf32>
      %39 = arith.subf %31, %38 : vector<4x8x8xf32>
      %40 = math.exp %39 : vector<4x8x8xf32>
      %c0_22 = arith.constant 0 : index
      %c0_23 = arith.constant 0 : index
      %c0_24 = arith.constant 0 : index
      %41 = vector.load %arg10[%c0_22, %c0_23, %c0_24] : memref<4x8x1xf32, #tpu.memory_space<vmem>>, vector<4x8x1xf32>
      %42 = arith.mulf %37, %41 : vector<4x8x1xf32>
      %cst_25 = arith.constant dense<0.000000e+00> : vector<4x8xf32>
      %43 = vector.multi_reduction <add>, %40, %cst_25 [2] : vector<4x8x8xf32> to vector<4x8xf32>
      %44 = vector.shape_cast %43 : vector<4x8xf32> to vector<4x8x1xf32>
      %45 = arith.addf %42, %44 : vector<4x8x1xf32>
      %c0_26 = arith.constant 0 : index
      %c0_27 = arith.constant 0 : index
      %c0_28 = arith.constant 0 : index
      %46 = vector.load %arg10[%c0_26, %c0_27, %c0_28] : memref<4x8x1xf32, #tpu.memory_space<vmem>>, vector<4x8x1xf32>
      tpu.vector_store %arg10[%c0_26, %c0_27, %c0_28], %45 {strides = array<i32>} : memref<4x8x1xf32, #tpu.memory_space<vmem>>, vector<4x8x1xf32>,
      %c0_29 = arith.constant 0 : index
      %c0_30 = arith.constant 0 : index
      %c0_31 = arith.constant 0 : index
      %47 = vector.load %arg11[%c0_29, %c0_30, %c0_31] : memref<4x8x8xf32, #tpu.memory_space<vmem>>, vector<4x8x8xf32>
      %48 = vector.broadcast %37 : vector<4x8x1xf32> to vector<4x8x8xf32>
      %49 = arith.mulf %48, %47 : vector<4x8x8xf32>
      %50 = arith.truncf %40 : vector<4x8x8xf32> to vector<4x8x8xbf16>
      "tpu.trace_start"() <{level = 10 : i32, message = "hqk,hkd->hqd"}> : () -> ()
      %cst_32 = arith.constant dense<0.000000e+00> : vector<4x8x8xf32>
      %51 = tpu.matmul %50, %18, %cst_32 {dimension_numbers = #tpu.dot_dimension_numbers<[2], [1], [1], [2], [0, 0, 0, 1, 1, 2], [0], [0]>} : vector<4x8x8xbf16>, vector<4x8x8xbf16>, vector<4x8x8xf32> -> vector<4x8x8xf32>
      "tpu.trace_stop"() : () -> ()
      %52 = arith.addf %49, %51 : vector<4x8x8xf32>
      %c0_33 = arith.constant 0 : index
      %c0_34 = arith.constant 0 : index
      %c0_35 = arith.constant 0 : index
      %53 = vector.load %arg11[%c0_33, %c0_34, %c0_35] : memref<4x8x8xf32, #tpu.memory_space<vmem>>, vector<4x8x8xf32>
      tpu.vector_store %arg11[%c0_33, %c0_34, %c0_35], %52 {strides = array<i32>} : memref<4x8x8xf32, #tpu.memory_space<vmem>>, vector<4x8x8xf32>,
      %c0_36 = arith.constant 0 : index
      %c0_37 = arith.constant 0 : index
      %c0_38 = arith.constant 0 : index
      %54 = vector.load %arg9[%c0_36, %c0_37, %c0_38] : memref<4x8x1xf32, #tpu.memory_space<vmem>>, vector<4x8x1xf32>
      tpu.vector_store %arg9[%c0_36, %c0_37, %c0_38], %35 {strides = array<i32>} : memref<4x8x1xf32, #tpu.memory_space<vmem>>, vector<4x8x1xf32>,
    } else {
    }
    %c0_i32_4 = arith.constant 0 : i32
    %10 = arith.cmpi eq, %arg2, %c0_i32_4 : i32
    %11 = arith.extui %10 : i1 to i32
    %c0_i32_5 = arith.constant 0 : i32
    %12 = arith.cmpi ne, %11, %c0_i32_5 : i32
    scf.if %12 {
      %c0 = arith.constant 0 : index
      %c0_6 = arith.constant 0 : index
      %c0_7 = arith.constant 0 : index
      %13 = vector.load %arg10[%c0, %c0_6, %c0_7] : memref<4x8x1xf32, #tpu.memory_space<vmem>>, vector<4x8x1xf32>
      %14 = tpu.reciprocal %13 {approx = true} : vector<4x8x1xf32> -> vector<4x8x1xf32>
      %c0_8 = arith.constant 0 : index
      %c0_9 = arith.constant 0 : index
      %c0_10 = arith.constant 0 : index
      %15 = vector.load %arg11[%c0_8, %c0_9, %c0_10] : memref<4x8x8xf32, #tpu.memory_space<vmem>>, vector<4x8x8xf32>
      %16 = vector.broadcast %14 : vector<4x8x1xf32> to vector<4x8x8xf32>
      %17 = arith.mulf %15, %16 : vector<4x8x8xf32>
      %cst = arith.constant 0.000000e+00 : f32
      %18 = vector.broadcast %cst : f32 to vector<8x32xf32>
      %19 = vector.extract_strided_slice %17 {offsets = [0, 0, 0], sizes = [1, 8, 8], strides = [1, 1, 1]} : vector<4x8x8xf32> to vector<1x8x8xf32>
      %20 = vector.shape_cast %19 : vector<1x8x8xf32> to vector<8x8xf32>
      %21 = arith.truncf %20 : vector<8x8xf32> to vector<8x8xbf16>
      %c0_11 = arith.constant 0 : index
      %c0_12 = arith.constant 0 : index
      %c0_13 = arith.constant 0 : index
      %22 = vector.load %arg6[%c0_11, %c0_12, %c0_13] : memref<4x8x32xbf16, #tpu.memory_space<vmem>>, vector<1x8x32xbf16>
      %23 = vector.shape_cast %22 : vector<1x8x32xbf16> to vector<8x32xbf16>
      %cst_14 = arith.constant dense<0.000000e+00> : vector<8x32xf32>
      %24 = tpu.matmul %21, %23, %cst_14 {dimension_numbers = #tpu.dot_dimension_numbers<[1], [0], [0], [1], [0, 0, 1, 1], [], []>} : vector<8x8xbf16>, vector<8x32xbf16>, vector<8x32xf32> -> vector<8x32xf32>
      %25 = arith.addf %18, %24 : vector<8x32xf32>
      %26 = vector.extract_strided_slice %17 {offsets = [1, 0, 0], sizes = [1, 8, 8], strides = [1, 1, 1]} : vector<4x8x8xf32> to vector<1x8x8xf32>
      %27 = vector.shape_cast %26 : vector<1x8x8xf32> to vector<8x8xf32>
      %28 = arith.truncf %27 : vector<8x8xf32> to vector<8x8xbf16>
      %c1 = arith.constant 1 : index
      %c0_15 = arith.constant 0 : index
      %c0_16 = arith.constant 0 : index
      %29 = vector.load %arg6[%c1, %c0_15, %c0_16] : memref<4x8x32xbf16, #tpu.memory_space<vmem>>, vector<1x8x32xbf16>
      %30 = vector.shape_cast %29 : vector<1x8x32xbf16> to vector<8x32xbf16>
      %cst_17 = arith.constant dense<0.000000e+00> : vector<8x32xf32>
      %31 = tpu.matmul %28, %30, %cst_17 {dimension_numbers = #tpu.dot_dimension_numbers<[1], [0], [0], [1], [0, 0, 1, 1], [], []>} : vector<8x8xbf16>, vector<8x32xbf16>, vector<8x32xf32> -> vector<8x32xf32>
      %32 = arith.addf %25, %31 : vector<8x32xf32>
      %33 = vector.extract_strided_slice %17 {offsets = [2, 0, 0], sizes = [1, 8, 8], strides = [1, 1, 1]} : vector<4x8x8xf32> to vector<1x8x8xf32>
      %34 = vector.shape_cast %33 : vector<1x8x8xf32> to vector<8x8xf32>
      %35 = arith.truncf %34 : vector<8x8xf32> to vector<8x8xbf16>
      %c2 = arith.constant 2 : index
      %c0_18 = arith.constant 0 : index
      %c0_19 = arith.constant 0 : index
      %36 = vector.load %arg6[%c2, %c0_18, %c0_19] : memref<4x8x32xbf16, #tpu.memory_space<vmem>>, vector<1x8x32xbf16>
      %37 = vector.shape_cast %36 : vector<1x8x32xbf16> to vector<8x32xbf16>
      %cst_20 = arith.constant dense<0.000000e+00> : vector<8x32xf32>
      %38 = tpu.matmul %35, %37, %cst_20 {dimension_numbers = #tpu.dot_dimension_numbers<[1], [0], [0], [1], [0, 0, 1, 1], [], []>} : vector<8x8xbf16>, vector<8x32xbf16>, vector<8x32xf32> -> vector<8x32xf32>
      %39 = arith.addf %32, %38 : vector<8x32xf32>
      %40 = vector.extract_strided_slice %17 {offsets = [3, 0, 0], sizes = [1, 8, 8], strides = [1, 1, 1]} : vector<4x8x8xf32> to vector<1x8x8xf32>
      %41 = vector.shape_cast %40 : vector<1x8x8xf32> to vector<8x8xf32>
      %42 = arith.truncf %41 : vector<8x8xf32> to vector<8x8xbf16>
      %c3 = arith.constant 3 : index
      %c0_21 = arith.constant 0 : index
      %c0_22 = arith.constant 0 : index
      %43 = vector.load %arg6[%c3, %c0_21, %c0_22] : memref<4x8x32xbf16, #tpu.memory_space<vmem>>, vector<1x8x32xbf16>
      %44 = vector.shape_cast %43 : vector<1x8x32xbf16> to vector<8x32xbf16>
      %cst_23 = arith.constant dense<0.000000e+00> : vector<8x32xf32>
      %45 = tpu.matmul %42, %44, %cst_23 {dimension_numbers = #tpu.dot_dimension_numbers<[1], [0], [0], [1], [0, 0, 1, 1], [], []>} : vector<8x8xbf16>, vector<8x32xbf16>, vector<8x32xf32> -> vector<8x32xf32>
      %46 = arith.addf %39, %45 : vector<8x32xf32>
      %c0_24 = arith.constant 0 : index
      %c0_25 = arith.constant 0 : index
      %47 = vector.load %arg7[%c0_24, %c0_25] : memref<1x32xf32, #tpu.memory_space<vmem>>, vector<1x32xf32>
      %48 = vector.broadcast %47 : vector<1x32xf32> to vector<8x32xf32>
      %49 = arith.addf %46, %48 : vector<8x32xf32>
      %c0_26 = arith.constant 0 : index
      %c0_27 = arith.constant 0 : index
      %c0_28 = arith.constant 0 : index
      %50 = vector.load %arg8[%c0_26, %c0_27, %c0_28] : memref<1x8x32xf32, #tpu.memory_space<vmem>>, vector<1x8x32xf32>
      %51 = vector.shape_cast %50 : vector<1x8x32xf32> to vector<8x32xf32>
      %52 = vector.shape_cast %49 : vector<8x32xf32> to vector<1x8x32xf32>
      tpu.vector_store %arg8[%c0_26, %c0_27, %c0_28], %52 {strides = array<i32>} : memref<1x8x32xf32, #tpu.memory_space<vmem>>, vector<1x8x32xf32>,
    } else {
    }
    return
  }
  func.func @transform_0(%arg0: i32, %arg1: i32, %arg2: i32) -> (i32, i32, i32, i32) {
    %c0_i32 = arith.constant 0 : i32
    %c0_i32_0 = arith.constant 0 : i32
    %c0_i32_1 = arith.constant 0 : i32
    return %arg0, %c0_i32, %arg1, %c0_i32_0 : i32, i32, i32, i32
  }
  func.func @transform_1(%arg0: i32, %arg1: i32, %arg2: i32) -> (i32, i32, i32, i32) {
    %c0_i32 = arith.constant 0 : i32
    %c0_i32_0 = arith.constant 0 : i32
    %c0_i32_1 = arith.constant 0 : i32
    return %arg0, %c0_i32, %arg2, %c0_i32_0 : i32, i32, i32, i32
  }
  func.func @transform_2(%arg0: i32, %arg1: i32, %arg2: i32) -> (i32, i32, i32, i32) {
    %c0_i32 = arith.constant 0 : i32
    %c0_i32_0 = arith.constant 0 : i32
    %c0_i32_1 = arith.constant 0 : i32
    return %arg0, %c0_i32, %arg2, %c0_i32_0 : i32, i32, i32, i32
  }
  func.func @transform_3(%arg0: i32, %arg1: i32, %arg2: i32) -> (i32, i32, i32) {
    %c0_i32 = arith.constant 0 : i32
    %c0_i32_0 = arith.constant 0 : i32
    %c0_i32_1 = arith.constant 0 : i32
    %c0_i32_2 = arith.constant 0 : i32
    return %c0_i32, %c0_i32_0, %c0_i32_1 : i32, i32, i32
  }
  func.func @transform_4(%arg0: i32, %arg1: i32, %arg2: i32) -> (i32, i32) {
    %c0_i32 = arith.constant 0 : i32
    %c0_i32_0 = arith.constant 0 : i32
    %c0_i32_1 = arith.constant 0 : i32
    return %c0_i32, %c0_i32_0 : i32, i32
  }
  func.func @transform_5(%arg0: i32, %arg1: i32, %arg2: i32) -> (i32, i32, i32) {
    %c0_i32 = arith.constant 0 : i32
    %c0_i32_0 = arith.constant 0 : i32
    return %arg0, %arg1, %c0_i32 : i32, i32, i32
  }
}

</mosaic_0001>

<bundles_post_ra>
// kernel: multi_head_self_attention.2
= control target key start
LH: loop header
LB: loop body
LE: loop exit
PB: predicated region body
PF: predicated region fallthrough
CT: control target
= control target key end

     0   :  { %s401_s9 = smov 0   ;;  %s403_s10 = smov 0   ;;  %s440_s0 = inlined_call_operand.vmem [shape: bf16[2,8,32], index: 0, kind: input, shape index: {}]   ;;  %s441_s1 = inlined_call_operand.vmem [shape: bf16[32,96], index: 1, kind: input, shape index: {}]   ;;  %s442_s2 = inlined_call_operand.vmem [shape: bf16[2,8,96], index: 2, kind: output, shape index: {}]  }
   0x1   :  { %s405_s11 = smov 0  }
   0x2 LB: > { %s24_s12 = sadd.s32 1, %s378_s10  ;;  %p313_p0 = scmp.ge.s32.totalorder %s382_s11, 1  ;;  %s382_s11 = sphi %s405_s11, %s12_s11   ;;  %s378_s10 = sphi %s403_s10, %s444_s10   ;;  %s374_s9 = sphi %s401_s9, %s443_s9  }
   0x3   : > { %p26_p1 = scmp.ge.s32.totalorder %s24_s12, 2  ;;  %p130_p2 = scmp.lt.s32.totalorder %s382_s11, 3 }
   0x5   : > { %s446_s12 = smov (%p26_p1, %s24_s12), 0  ;;  %p131_p3 = pnand %p313_p0, %p130_p2 }
   0x6   : > { %v358_v0 = vld [vmem:[%s441_s1] sm:$0xff] (!%p131_p3)   ;;  %v384_v1 = vmov (!%p131_p3), 0.0   ;;  %v359_v2 = vld [vmem:[%s441_s1 + $0x8] sm:$0xff] (!%p131_p3)   ;;  %vm385_vm0 = vmmov (!%p131_p3), 0   ;;  %p156_p4 = scmp.lt.s32.totalorder (!%p131_p3), %s374_s9, 1  ;;  %vm188_vm1 = vcmask (!%p131_p3), 261120  }
   0x7   : > { %134 = sbr.rel (%p131_p3) target bundleno = 233 (0xe9), region = 28  ;;  %324 = vmatprep.subr.bf16.mxu0 (!%p131_p3), %v384_v1  ;;  %328 = vmatprep.mubr.msk.bf16.mxu0 (!%p131_p3), %vm385_vm0, %v384_v1  ;;  %vm233_vm2 = vcmask (!%p131_p3), 781312  }
   0x8   : > { %325 = vmatpush3.bf16.msra.mxu0 (!%p131_p3), %v358_v0 }
   0x9   : > { %326 = vmatprep.subr.bf16.mxu0 (!%p131_p3), %v384_v1 }
   0xc   : > { %327 = vmatpush3.bf16.msra.mxu0 (!%p131_p3), %v359_v2 }
   0xe   : > { %s448_s9 = smov (!%p156_p4, %s374_s9), 1 }
   0xf   : > { %s314_s17 = sshll.u32 %s448_s9, 2 }
  0x10   : > { %s162_s20 = scalar_lea.vmem %s440_s0, %s314_s17  ;;  %s169_s23 = scalar_lea.vmem %s442_s2, %s314_s17 }
  0x11   : > { %v171_v3 = vld [vmem:[%s162_s20] sm:$0xf] }
  0x12   : > { %329 = vmatmul.mubr.msk.bf16.vlgmr.msra.gmra.mrb[0].mxu0 %vm188_vm1, %v171_v3 }
  0xe5   : > { %v226_v4 = vpop.f32.mrb[0].mxu0 }
  0xe6   : > { %v232_v5 = vpack.c.bf16 %v226_v4, %v226_v4  ;;  %v330_v6 = vpop.f32.mrb[1].mxu0 }
  0xe7   : > { %v229_v7 = vpop.f32.mrb[2].mxu0 }
  0xe8   : > { %234 = vst.msk [vmem:[%s169_s23] sm:$0xf] %vm233_vm2, %v232_v5  ;;  %v331_v8 = vpop.f32.mrb[3].mxu0 }
  0xe9 PF: > { %s12_s11 = sadd.s32 1, %s382_s11   ;;  %s443_s9 = smov %s378_s10 }
  0xea   : > { %p9_p5 = scmp.ge.s32.totalorder %s12_s11, 4   ;;  %s444_s10 = smov %s446_s12 }
  0xec   :  { %11 = sbr.rel (!%p9_p5) target bundleno = 2 (0x2), region = 58 }

// kernel: multi_head_self_attention.3
= control target key start
LH: loop header
LB: loop body
LE: loop exit
PB: predicated region body
PF: predicated region fallthrough
CT: control target
= control target key end

     0   :  { %10 = vsyncpa [#allocation6], 0  ;;  %s1892_s0 = inlined_call_operand.vmem [shape: bf16[2,4,8,8], index: 0, kind: input, shape index: {}]   ;;  %s1893_s1 = inlined_call_operand.vmem [shape: bf16[2,4,8,8], index: 1, kind: input, shape index: {}]   ;;  %s1894_s2 = inlined_call_operand.vmem [shape: bf16[2,4,8,8], index: 2, kind: input, shape index: {}]   ;;  %s1895_s3 = inlined_call_operand.vmem [shape: bf16[4,8,32], index: 3, kind: input, shape index: {}]   ;;  %s1896_s4 = inlined_call_operand.vmem [shape: f32[1,32], index: 4, kind: input, shape index: {}]   ;;  %s1897_s5 = inlined_call_operand.hbm [shape: f32[2,8,32], index: 5, kind: output, shape index: {}]  }
   0x1   :  { %12 = vsyncpa [#allocation6 + $0x1], 0  ;;  %s1584_s18 = smov 0   ;;  %s1586_s19 = smov 0  }
   0x2   :  { %s1588_s20 = smov 0   ;;  %s1590_s21 = smov 0  }
   0x3   :  { %s1592_s22 = smov 0   ;;  %s1594_s23 = smov 0  }
   0x4 LB: > { %s1253_s24 = sadd.s32 4294967295, %s1547_s23   ;;  %s1254_s25 = sadd.s32 4294967294, %s1547_s23   ;;  %s1547_s23 = sphi %s1594_s23, %s18_s23   ;;  %s1543_s22 = sphi %s1592_s22, %s1904_s22   ;;  %s1539_s21 = sphi %s1590_s21, %s1903_s21   ;;  %s1535_s20 = sphi %s1588_s20, %s1902_s20   ;;  %s1531_s19 = sphi %s1586_s19, %s1901_s19   ;;  %s1527_s18 = sphi %s1584_s18, %s1900_s18  }
   0x5   : > { %s37_s26 = sadd.s32 1, %s1543_s22  ;;  %s172_s27 = sadd.s32 1, %s1535_s20 }
   0x6   : > { %p39_p0 = scmp.ge.s32.totalorder %s37_s26, 2  ;;  %p182_p1 = scmp.ne.s32.totalorder %s1535_s20, %s1531_s19 }
   0x7   : > { %p183_p2 = scmp.eq.s32.totalorder %s1253_s24, 1  ;;  %p188_p3 = scmp.ne.s32.totalorder %s1531_s19, %s1527_s18 }
   0x8   : > { %s1906_s26 = smov (%p39_p0, %s37_s26), 0  ;;  %p189_p5 = scmp.eq.s32.totalorder %s1254_s25, 1 }
   0x9   : > { %p1624_p4 = por %p183_p2, %p182_p1  ;;  %s167_s29 = ssub.s32 %s1543_s22, %s1906_s26 }
   0xa   : > { %p1257_p6 = scmp.ge.s32.totalorder %s1547_s23, 1  ;;  %p170_p7 = scmp.eq.s32.totalorder %s167_s29, 0 }
   0xb   : > { %p1631_p8 = por %p189_p5, %p188_p3  ;;  %p246_p9 = scmp.lt.s32.totalorder %s1547_s23, 3 }
   0xc   : > { %s1637_s6 = scalar_select %p170_p7, %s1535_s20, %s172_s27  }
   0xd   : > { %p247_p10 = pnand %p1257_p6, %p246_p9 }
   0xe   : > { %p293_p11 = scmp.lt.s32.totalorder (!%p247_p10), %s1539_s21, 1  ;;  %vm333_vm0 = vcmask (!%p247_p10), 64512   ;;  %v1549_v0 = vmov (!%p247_p10), 0.0   ;;  %vm1550_vm1 = vmmov (!%p247_p10), 0   ;;  %vm324_vm2 = vcmask (!%p247_p10), 7168   ;;  %s1282_s15 = sshll.u32 (!%p247_p10), %s1539_s21, 7 }
   0xf   : > { %250 = sbr.rel (%p247_p10) target bundleno = 1076 (0x434), region = 40  ;;  %1312 = vmatprep.subr.bf16.mxu0 (!%p247_p10), %v1549_v0  ;;  %334 = vst.msk [vmem:[#allocation4] sm:$0xff] (!%p247_p10), %vm333_vm0, %v1549_v0  ;;  %335 = vst.msk [vmem:[#allocation4 + $0x8] sm:$0xff] (!%p247_p10), %vm333_vm0, %v1549_v0  ;;  %1318 = vmatprep.subr.bf16.mxu1 (!%p247_p10), %v1549_v0  ;;  %v1551_v13 = vmov (!%p247_p10), -1e+30   ;;  %v540_v14 = vlaneseq (!%p247_p10)  ;;  %v1552_v41 = vmov (!%p247_p10), 0   ;;  %s1845_s27 = scalar_lea.hbm (!%p247_p10), %s1897_s5, %s1282_s15 }
  0x10   : > { %336 = vst.msk [vmem:[#allocation4 + $0x10] sm:$0xff] (!%p247_p10), %vm333_vm0, %v1549_v0  ;;  %337 = vst.msk [vmem:[#allocation4 + $0x18] sm:$0xff] (!%p247_p10), %vm333_vm0, %v1549_v0  ;;  %1314 = vmatprep.mubr.msk.bf16.mxu0 (!%p247_p10), %vm1550_vm1, %v1549_v0  ;;  %1320 = vmatprep.mubr.msk.bf16.mxu1 (!%p247_p10), %vm1550_vm1, %v1549_v0  ;;  %vm683_vm4 = vcmask (!%p247_p10), 1043456   ;;  %vm1123_vm5 = vcmask (!%p247_p10), 261120  }
  0x11   : > { %325 = vst.msk [vmem:[#allocation2] sm:$0xff] (!%p247_p10), %vm324_vm2, %v1551_v13  ;;  %326 = vst.msk [vmem:[#allocation2 + $0x8] sm:$0xff] (!%p247_p10), %vm324_vm2, %v1551_v13  ;;  %v541_v15 = vshrl.u32 (!%p247_p10), %v540_v14, 7  ;;  %v545_v16 = vand.u32 (!%p247_p10), 127, %v540_v14  ;;  %1443 = vset.pattern.permute.xlu0 (!%p247_p10), %v1552_v41  ;;  %1444 = vset.pattern.permute.xlu1 (!%p247_p10), %v1552_v41 }
  0x12   : > { %327 = vst.msk [vmem:[#allocation2 + $0x10] sm:$0xff] (!%p247_p10), %vm324_vm2, %v1551_v13  ;;  %328 = vst.msk [vmem:[#allocation2 + $0x18] sm:$0xff] (!%p247_p10), %vm324_vm2, %v1551_v13 }
  0x13   : > { %329 = vst.msk [vmem:[#allocation3] sm:$0xff] (!%p247_p10), %vm324_vm2, %v1549_v0  ;;  %330 = vst.msk [vmem:[#allocation3 + $0x8] sm:$0xff] (!%p247_p10), %vm324_vm2, %v1549_v0  ;;  %vm548_vm3 = vcmp.ge.s32.totalorder (!%p247_p10), %v541_v15, %v545_v16 }
  0x14   : > { %331 = vst.msk [vmem:[#allocation3 + $0x10] sm:$0xff] (!%p247_p10), %vm324_vm2, %v1549_v0  ;;  %332 = vst.msk [vmem:[#allocation3 + $0x18] sm:$0xff] (!%p247_p10), %vm324_vm2, %v1549_v0 }
  0x16   : > { %s294_s7 = scalar_select %p293_p11, %s1539_s21, 1 }
  0x18   : > { %s1655_s8 = sshll.u32 %s294_s7, 4  ;;  %v1714_v42 = vld [vmem:[#allocation2] sm:$0xff]  ;;  %v1719_v45 = vld [vmem:[#allocation2 + $0x8] sm:$0xff]  ;;  %s1553_s7 = smov [#allocation5]  }
  0x19   : > { %s308_s11 = scalar_lea.vmem %s1893_s1, %s1655_s8  ;;  %s300_s14 = scalar_lea.vmem %s1892_s0, %s1655_s8  ;;  %v1729_v49 = vld [vmem:[#allocation2 + $0x10] sm:$0xff]  ;;  %v1739_v53 = vld [vmem:[#allocation2 + $0x18] sm:$0xff] }
  0x1a   : > { %v347_v1 = vld [vmem:[%s308_s11] sm:$0xf]  ;;  %v348_v2 = vld [vmem:[%s308_s11 + $0x4] sm:$0xf]  ;;  %v349_v5 = vld [vmem:[%s308_s11 + $0x8] sm:$0xf]  ;;  %s1753_s17 = scalar_lea.vmem %s1894_s2, %s1655_s8 }
  0x1b   : > { %v360_v3 = vsel %vm333_vm0, %v347_v1, 0  ;;  %v406_v4 = vsel %vm333_vm0, %v348_v2, 0  ;;  %v350_v6 = vld [vmem:[%s308_s11 + $0xc] sm:$0xf]  ;;  %v343_v7 = vld [vmem:[%s300_s14] sm:$0xf] }
  0x1c   : > { %1313 = vmatpush3.bf16.xpose.msra.mxu0 %v360_v3  ;;  %1319 = vmatpush3.bf16.xpose.msra.mxu1 %v406_v4  ;;  %v344_v8 = vld [vmem:[%s300_s14 + $0x4] sm:$0xf]  ;;  %v452_v9 = vsel %vm333_vm0, %v349_v5, 0  ;;  %v498_v10 = vsel %vm333_vm0, %v350_v6, 0  ;;  %v345_v11 = vld [vmem:[%s300_s14 + $0x8] sm:$0xf] }
  0x1d   : > { %1324 = vmatprep.subr.bf16.mxu0 %v1549_v0  ;;  %1330 = vmatprep.subr.bf16.mxu1 %v1549_v0  ;;  %v346_v12 = vld [vmem:[%s300_s14 + $0xc] sm:$0xf]  ;;  %v351_v58 = vld [vmem:[%s1753_s17] sm:$0xf]  ;;  %v352_v60 = vld [vmem:[%s1753_s17 + $0x4] sm:$0xf] }
  0x1e   : > { %v685_v59 = vsel %vm683_vm4, %v351_v58, 0  ;;  %v731_v61 = vsel %vm683_vm4, %v352_v60, 0  ;;  %v354_v16 = vld [vmem:[%s1753_s17 + $0xc] sm:$0xf]  ;;  %v1273_v58 = vld [vmem:[%s1895_s3 + $0x4] sm:$0xf] }
  0x1f   : > { %v927_v60 = vsel %vm683_vm4, %v1273_v58, 0  ;;  %s290_s11 = sand.u32 1, %s1531_s19   ;;  %s1473_s8 = sshll.u32 %s1553_s7, 4  ;;  %s1474_s8 = int_to_ptr.vmem [resolvable:$false] %s1473_s8 }
  0x20   : > { %s1258_s12 = sshll.u32 %s290_s11, 3  ;;  %s1126_s29 = scalar_lea.sflag [#allocation6], %s290_s11 }
  0x21   : > { %s292_s16 = scalar_lea.vmem [#allocation5], %s1258_s12  ;;  %s1475_s9 = scalar_lea.vmem %s1474_s8, 256 }
  0x23   : > { %1315 = vmatmul.mubr.msk.bf16.vlgmr.msra.gmra.mrb[0].mxu0 %vm333_vm0, %v343_v7  ;;  %1321 = vmatmul.mubr.msk.bf16.vlgmr.msra.gmra.mrb[0].mxu1 %vm333_vm0, %v344_v8 }
  0x24   : > { %1325 = vmatpush3.bf16.xpose.msra.mxu0 %v452_v9  ;;  %1331 = vmatpush3.bf16.xpose.msra.mxu1 %v498_v10  ;;  %v353_v10 = vld [vmem:[%s1753_s17 + $0x8] sm:$0xf]  ;;  %s1140_s17 = sshll.u32 %s292_s16, 4  ;;  %s1847_s17 = int_to_ptr.vmem [resolvable:$true] %s1140_s17 }
  0x25   : > { %1326 = vmatprep.mubr.msk.bf16.mxu0 %vm1550_vm1, %v1549_v0  ;;  %1332 = vmatprep.mubr.msk.bf16.mxu1 %vm1550_vm1, %v1549_v0  ;;  %v777_v15 = vsel %vm683_vm4, %v353_v10, 0  ;;  %s1469_s21 = scalar_lea.vmem %s1847_s17, 128  ;;  %p1476_p1 = scmp.lt.s32.totalorder %s1847_s17, %s1474_s8 }
  0x26   : > { %1336 = vmatprep.subr.bf16.mxu0 %v1549_v0  ;;  %1342 = vmatprep.subr.bf16.mxu1 %v1549_v0  ;;  %p1470_p12 = scmp.ne.s32.totalorder %s1847_s17, %s1469_s21  ;;  %p1477_p2 = scmp.lt.s32.totalorder %s1475_s9, %s1469_s21 }
  0x28   : > { %p1471_p13 = pnand %p1470_p12, %p1624_p4  ;;  %p1478_p3 = por %p1477_p2, %p1476_p1 }
  0x2a   : > { %p1472_p0 = pneg %p1471_p13 }
  0x2b   : > { %1327 = vmatmul.mubr.msk.bf16.vlgmr.msra.gmra.mrb[4].mxu0 %vm333_vm0, %v345_v11  ;;  %1333 = vmatmul.mubr.msk.bf16.vlgmr.msra.gmra.mrb[4].mxu1 %vm333_vm0, %v346_v12 }
  0x2c   : > { %1338 = vmatprep.mubr.msk.bf16.mxu0 %vm1550_vm1, %v1549_v0  ;;  %1344 = vmatprep.mubr.msk.bf16.mxu1 %vm1550_vm1, %v1549_v0  ;;  %p1479_p5 = pnand %p1478_p3, %p1472_p0 }
  0x2d   : > { %1337 = vmatpush3.bf16.msra.mxu0 %v685_v59  ;;  %1343 = vmatpush3.bf16.msra.mxu1 %v731_v61 }
  0x2e   : > { %1348 = vmatprep.subr.bf16.mxu0 %v1549_v0  ;;  %1354 = vmatprep.subr.bf16.mxu1 %v1549_v0 }
  0xf6   : > { %v396_v17 = vpop.f32.mrb[0].mxu0  ;;  %v442_v18 = vpop.f32.mrb[0].mxu1 }
  0xf7   : > { %v1698_v19 = vsel %vm548_vm3, %v396_v17, -1e+30  ;;  %v1316_v20 = vpop.f32.mrb[1].mxu0  ;;  %v1701_v21 = vsel %vm548_vm3, %v442_v18, -1e+30  ;;  %v1322_v22 = vpop.f32.mrb[1].mxu1 }
  0xf8   : > { %v399_v23 = vpop.f32.mrb[2].mxu0  ;;  %v445_v24 = vpop.f32.mrb[2].mxu1  ;;  %v559_v25 = vsel %vm333_vm0, %v1698_v19, -inf  ;;  %v562_v28 = vsel %vm333_vm0, %v1701_v21, -inf  ;;  %v823_v20 = vsel %vm683_vm4, %v354_v16, 0 }
  0xf9   : > { %560 = vmax.xlane.f32.xlu0 %v559_v25  ;;  %v1317_v26 = vpop.f32.mrb[3].mxu0  ;;  %v1323_v27 = vpop.f32.mrb[3].mxu1 }
  0xfd   : > { %563 = vmax.xlane.f32.xlu0 %v562_v28 }
  0xfe   : > { %v488_v29 = vpop.f32.mrb[4].mxu0  ;;  %v534_v30 = vpop.f32.mrb[4].mxu1 }
  0xff   : > { %v553_v31 = vsel %vm548_vm3, %v488_v29, -1e+30  ;;  %v1328_v32 = vpop.f32.mrb[5].mxu0  ;;  %v1709_v33 = vsel %vm548_vm3, %v534_v30, -1e+30  ;;  %v1334_v34 = vpop.f32.mrb[5].mxu1 }
 0x100   : > { %v491_v35 = vpop.f32.mrb[6].mxu0  ;;  %v565_v36 = vsel %vm333_vm0, %v553_v31, -inf  ;;  %v537_v37 = vpop.f32.mrb[6].mxu1  ;;  %v568_v40 = vsel %vm333_vm0, %v1709_v33, -inf }
 0x101   : > { %566 = vmax.xlane.f32.xlu1 %v565_v36  ;;  %v1329_v38 = vpop.f32.mrb[7].mxu0  ;;  %v1335_v39 = vpop.f32.mrb[7].mxu1  ;;  %v619_v35 = vld [vmem:[#allocation3] sm:$0xff] }
 0x102   : > { %v620_v38 = vld [vmem:[#allocation3 + $0x8] sm:$0xff] }
 0x105   : > { %569 = vmax.xlane.f32.xlu1 %v568_v40 }
 0x186   : > { %v561_v43 = vpop.xlane.xlu0 %560 }
 0x187   : > { %v1717_v44 = vmax.f32 %v1714_v42, %v561_v43 }
 0x189   : > { %v575_v46 = vsub.f32 %v1714_v42, %v1717_v44  ;;  %873 = vst.msk [vmem:[#allocation2] sm:$0xff] %vm324_vm2, %v1717_v44  ;;  %589 = vperm.xlu0 %1443, %v1717_v44   ;;  %v621_v42 = vld [vmem:[#allocation3 + $0x10] sm:$0xff] }
 0x18a   : > { %v564_v47 = vpop.xlane.xlu0 %563 }
 0x18b   : > { %v1727_v48 = vmax.f32 %v1719_v45, %v564_v47  ;;  %v579_v22 = vmul.f32 1.442695, %v575_v46  ;;  %v622_v46 = vld [vmem:[#allocation3 + $0x18] sm:$0xff] }
 0x18d   : > { %v576_v50 = vsub.f32 %v1719_v45, %v1727_v48  ;;  %874 = vst.msk [vmem:[#allocation2 + $0x8] sm:$0xff] %vm324_vm2, %v1727_v48  ;;  %594 = vperm.xlu1 %1444, %v1727_v48  }
 0x18e   : > { %v567_v51 = vpop.xlane.xlu1 %566 }
 0x18f   : > { %v1737_v52 = vmax.f32 %v1729_v49, %v567_v51  ;;  %v581_v28 = vmul.f32 1.442695, %v576_v50 }
 0x191   : > { %v577_v54 = vsub.f32 %v1729_v49, %v1737_v52  ;;  %875 = vst.msk [vmem:[#allocation2 + $0x10] sm:$0xff] %vm324_vm2, %v1737_v52  ;;  %599 = vperm.xlu1 %1444, %v1737_v52  }
 0x192   : > { %v570_v55 = vpop.xlane.xlu1 %569 }
 0x193   : > { %v1747_v56 = vmax.f32 %v1739_v53, %v570_v55  ;;  %v583_v29 = vmul.f32 1.442695, %v577_v54  ;;  %v917_v55 = vld [vmem:[%s1895_s3] sm:$0xf] }
 0x195   : > { %v578_v57 = vsub.f32 %v1739_v53, %v1747_v56  ;;  %876 = vst.msk [vmem:[#allocation2 + $0x18] sm:$0xff] %vm324_vm2, %v1747_v56  ;;  %604 = vperm.xlu1 %1444, %v1747_v56  }
 0x208   : > { %v590_v62 = vpop.permute.xlu0 %589 }
 0x209   : > { %v607_v63 = vsub.f32 %v1698_v19, %v590_v62 }
 0x20b   : > { %v611_v1 = vmul.f32 1.442695, %v607_v63  ;;  %v648_v63 = vld [vmem:[#allocation4] sm:$0xff] }
 0x20c   : > { %v595_v2 = vpop.permute.xlu1 %594 }
 0x20d   : > { %1445 = vpow2.f32 %v611_v1  ;;  %v608_v3 = vsub.f32 %v1701_v21, %v595_v2 }
 0x20f   : > { %v613_v4 = vmul.f32 1.442695, %v608_v3 }
 0x210   : > { %v600_v5 = vpop.permute.xlu1 %599 }
 0x211   : > { %1447 = vpow2.f32 %v613_v4  ;;  %v609_v6 = vsub.f32 %v553_v31, %v600_v5  ;;  %v585_v31 = vmul.f32 1.442695, %v578_v57  ;;  %v973_v57 = vsel %vm683_vm4, %v917_v55, 0  ;;  %v649_v4 = vld [vmem:[#allocation4 + $0x8] sm:$0xff] }
 0x213   : > { %v615_v7 = vmul.f32 1.442695, %v609_v6 }
 0x214   : > { %v605_v8 = vpop.permute.xlu1 %604 }
 0x215   : > { %1449 = vpow2.f32 %v615_v7  ;;  %v610_v9 = vsub.f32 %v1709_v33, %v605_v8 }
 0x217   : > { %v1446_v11 = vpop.eup %1445  ;;  %v617_v12 = vmul.f32 1.442695, %v610_v9 }
 0x218   : > { %v627_v13 = vsel %vm333_vm0, %v1446_v11, 0.0  ;;  %v676_v14 = vpack.c.bf16 %v1446_v11, %v1446_v11 }
 0x219   : > { %1451 = vpow2.f32 %v617_v12  ;;  %628 = vadd.xlane.f32.xlu0 %v627_v13  ;;  %v650_v12 = vld [vmem:[#allocation4 + $0x10] sm:$0xff] }
 0x21a   : > { %1339 = vmatmul.mubr.msk.bf16.vlgmr.msra.gmra.mrb[8].mxu0 %vm333_vm0, %v676_v14  ;;  %1453 = vpow2.f32 %v579_v22 }
 0x21b   : > { %v1448_v17 = vpop.eup %1447  ;;  %1349 = vmatpush3.bf16.msra.mxu0 %v777_v15  ;;  %1350 = vmatprep.mubr.msk.bf16.mxu0 %vm1550_vm1, %v1549_v0  ;;  %1455 = vpow2.f32 %v581_v28 }
 0x21c   : > { %v630_v18 = vsel %vm333_vm0, %v1448_v17, 0.0  ;;  %v677_v19 = vpack.c.bf16 %v1448_v17, %v1448_v17  ;;  %1360 = vmatprep.subr.bf16.mxu0 %v1549_v0  ;;  %1457 = vpow2.f32 %v583_v29 }
 0x21d   : > { %631 = vadd.xlane.f32.xlu1 %v630_v18  ;;  %1459 = vpow2.f32 %v585_v31 }
 0x21e   : > { %1345 = vmatmul.mubr.msk.bf16.vlgmr.msra.gmra.mrb[8].mxu1 %vm333_vm0, %v677_v19  ;;  %v651_v19 = vld [vmem:[#allocation4 + $0x18] sm:$0xff] }
 0x21f   : > { %v1450_v21 = vpop.eup %1449  ;;  %1355 = vmatpush3.bf16.msra.mxu1 %v823_v20  ;;  %1356 = vmatprep.mubr.msk.bf16.mxu1 %vm1550_vm1, %v1549_v0 }
 0x220   : > { %v633_v23 = vsel %vm333_vm0, %v1450_v21, 0.0  ;;  %v678_v24 = vpack.c.bf16 %v1450_v21, %v1450_v21  ;;  %1366 = vmatprep.subr.bf16.mxu1 %v1549_v0 }
 0x221   : > { %634 = vadd.xlane.f32.xlu1 %v633_v23 }
 0x222   : > { %1351 = vmatmul.mubr.msk.bf16.vlgmr.msra.gmra.mrb[12].mxu0 %vm333_vm0, %v678_v24 }
 0x223   : > { %v1452_v25 = vpop.eup %1451  ;;  %1362 = vmatprep.mubr.msk.bf16.mxu0 %vm1550_vm1, %v1549_v0  ;;  %1361 = vmatpush3.bf16.msra.mxu0 %v927_v60 }
 0x224   : > { %v636_v26 = vsel %vm333_vm0, %v1452_v25, 0.0  ;;  %v679_v27 = vpack.c.bf16 %v1452_v25, %v1452_v25  ;;  %v1454_v30 = vpop.eup %1453  ;;  %1372 = vmatprep.subr.bf16.mxu0 %v1549_v0 }
 0x225   : > { %637 = vadd.xlane.f32.xlu1 %v636_v26  ;;  %v1456_v32 = vpop.eup %1455  ;;  %v623_v36 = vmul.f32 %v1454_v30, %v619_v35 }
 0x226   : > { %1357 = vmatmul.mubr.msk.bf16.vlgmr.msra.gmra.mrb[12].mxu1 %vm333_vm0, %v679_v27  ;;  %v1458_v33 = vpop.eup %1457  ;;  %v624_v40 = vmul.f32 %v1456_v32, %v620_v38 }
 0x227   : > { %1368 = vmatprep.mubr.msk.bf16.mxu1 %vm1550_vm1, %v1549_v0  ;;  %v1460_v34 = vpop.eup %1459  ;;  %v625_v44 = vmul.f32 %v1458_v33, %v621_v42  ;;  %1367 = vmatpush3.bf16.msra.mxu1 %v973_v57 }
 0x228   : > { %v626_v49 = vmul.f32 %v1460_v34, %v622_v46  ;;  %1378 = vmatprep.subr.bf16.mxu1 %v1549_v0 }
 0x22f   : > { %654 = vperm.xlu0 %1443, %v1454_v30  }
 0x236   : > { %659 = vperm.xlu1 %1444, %v1456_v32  }
 0x23a   : > { %664 = vperm.xlu1 %1444, %v1458_v33  }
 0x23e   : > { %669 = vperm.xlu1 %1444, %v1460_v34   ;;  %v1278_v34 = vld [vmem:[%s1895_s3 + $0xc] sm:$0xf] }
 0x2a6   : > { %v629_v37 = vpop.xlane.xlu0 %628 }
 0x2a7   : > { %v639_v39 = vadd.f32 %v629_v37, %v623_v36  ;;  %v1072_v37 = vsel %vm683_vm4, %v1278_v34, 0 }
 0x2a9   : > { %644 = vst.msk [vmem:[#allocation3] sm:$0xff] %vm324_vm2, %v639_v39 }
 0x2aa   : > { %v632_v41 = vpop.xlane.xlu1 %631 }
 0x2ab   : > { %v640_v43 = vadd.f32 %v632_v41, %v624_v40  ;;  %v1276_v40 = vld [vmem:[%s1895_s3 + $0x8] sm:$0xf] }
 0x2ad   : > { %645 = vst.msk [vmem:[#allocation3 + $0x8] sm:$0xff] %vm324_vm2, %v640_v43  ;;  %v1022_v43 = vsel %vm683_vm4, %v1276_v40, 0 }
 0x2ae   : > { %v635_v45 = vpop.xlane.xlu1 %634  ;;  %v655_v1 = vpop.permute.xlu0 %654 }
 0x2af   : > { %v641_v47 = vadd.f32 %v635_v45, %v625_v44  ;;  %v672_v3 = vmul.f32 %v655_v1, %v648_v63 }
 0x2b0   : > { %v880_v48 = vld [vmem:[#allocation3] sm:$0xff] }
 0x2b1   : > { %646 = vst.msk [vmem:[#allocation3 + $0x10] sm:$0xff] %vm324_vm2, %v641_v47  ;;  %1461 = vrcp.f32 %v880_v48 }
 0x2b2   : > { %v638_v50 = vpop.xlane.xlu1 %637 }
 0x2b3   : > { %v642_v51 = vadd.f32 %v638_v50, %v626_v49 }
 0x2b4   : > { %v881_v52 = vld [vmem:[#allocation3 + $0x8] sm:$0xff] }
 0x2b5   : > { %647 = vst.msk [vmem:[#allocation3 + $0x18] sm:$0xff] %vm324_vm2, %v642_v51  ;;  %1463 = vrcp.f32 %v881_v52 }
 0x2b6   : > { %v660_v2 = vpop.permute.xlu1 %659 }
 0x2b7   : > { %v673_v10 = vmul.f32 %v660_v2, %v649_v4  ;;  %v1280_v2 = vld [vmem:[%s1896_s4] ss:$0 sm:$0xff] }
 0x2b8   : > { %v882_v53 = vld [vmem:[#allocation3 + $0x10] sm:$0xff] }
 0x2b9   : > { %1465 = vrcp.f32 %v882_v53 }
 0x2ba   : > { %v665_v8 = vpop.permute.xlu1 %664 }
 0x2bb   : > { %v1462_v54 = vpop.eup %1461  ;;  %v674_v17 = vmul.f32 %v665_v8, %v650_v12 }
 0x2bc   : > { %894 = vperm.xlu0 %1443, %v1462_v54   ;;  %v883_v56 = vld [vmem:[#allocation3 + $0x18] sm:$0xff] }
 0x2bd   : > { %1467 = vrcp.f32 %v883_v56 }
 0x2be   : > { %v670_v20 = vpop.permute.xlu1 %669 }
 0x2bf   : > { %v1464_v59 = vpop.eup %1463  ;;  %v675_v25 = vmul.f32 %v670_v20, %v651_v19 }
 0x2c0   : > { %899 = vperm.xlu1 %1444, %v1464_v59  }
 0x2c3   : > { %v1466_v61 = vpop.eup %1465 }
 0x2c4   : > { %904 = vperm.xlu1 %1444, %v1466_v61  }
 0x2c7   : > { %v1468_v62 = vpop.eup %1467 }
 0x2c8   : > { %909 = vperm.xlu0 %1443, %v1468_v62  }
 0x2ed   : > { %v721_v5 = vpop.f32.mrb[8].mxu0 }
 0x2ee   : > { %v865_v6 = vadd.f32 %v721_v5, %v672_v3  ;;  %v1340_v7 = vpop.f32.mrb[9].mxu0 }
 0x2ef   : > { %v724_v9 = vpop.f32.mrb[10].mxu0 }
 0x2f0   : > { %869 = vst.msk [vmem:[#allocation4] sm:$0xff] %vm333_vm0, %v865_v6  ;;  %v1341_v11 = vpop.f32.mrb[11].mxu0 }
 0x2f1   : > { %v767_v13 = vpop.f32.mrb[8].mxu1 }
 0x2f2   : > { %v866_v14 = vadd.f32 %v767_v13, %v673_v10  ;;  %v1346_v15 = vpop.f32.mrb[9].mxu1 }
 0x2f3   : > { %v770_v16 = vpop.f32.mrb[10].mxu1 }
 0x2f4   : > { %870 = vst.msk [vmem:[#allocation4 + $0x8] sm:$0xff] %vm333_vm0, %v866_v14  ;;  %v1347_v18 = vpop.f32.mrb[11].mxu1 }
 0x2f5   : > { %v813_v21 = vpop.f32.mrb[12].mxu0 }
 0x2f6   : > { %v867_v22 = vadd.f32 %v813_v21, %v674_v17  ;;  %v1352_v23 = vpop.f32.mrb[13].mxu0 }
 0x2f7   : > { %v816_v24 = vpop.f32.mrb[14].mxu0  ;;  %v888_v33 = vld [vmem:[#allocation4] sm:$0xff] }
 0x2f8   : > { %871 = vst.msk [vmem:[#allocation4 + $0x10] sm:$0xff] %vm333_vm0, %v867_v22  ;;  %v1353_v26 = vpop.f32.mrb[15].mxu0 }
 0x2f9   : > { %v859_v27 = vpop.f32.mrb[12].mxu1 }
 0x2fa   : > { %v868_v28 = vadd.f32 %v859_v27, %v675_v25  ;;  %v1358_v29 = vpop.f32.mrb[13].mxu1 }
 0x2fb   : > { %v862_v30 = vpop.f32.mrb[14].mxu1  ;;  %v889_v38 = vld [vmem:[#allocation4 + $0x8] sm:$0xff] }
 0x2fc   : > { %872 = vst.msk [vmem:[#allocation4 + $0x18] sm:$0xff] %vm333_vm0, %v868_v28  ;;  %v1359_v31 = vpop.f32.mrb[15].mxu1 }
 0x2ff   : > { %v890_v45 = vld [vmem:[#allocation4 + $0x10] sm:$0xff] }
 0x303   : > { %v891_v48 = vld [vmem:[#allocation4 + $0x18] sm:$0xff] }
 0x33b   : > { %v895_v32 = vpop.permute.xlu0 %894 }
 0x33c   : > { %v912_v35 = vmul.f32 %v895_v32, %v888_v33 }
 0x33e   : > { %v916_v36 = vpack.c.bf16 %v912_v35, %v912_v35 }
 0x33f   : > { %v900_v39 = vpop.permute.xlu1 %899 }
 0x340   : > { %v913_v41 = vmul.f32 %v900_v39, %v889_v38  ;;  %1369 = vmatmul.mubr.msk.bf16.vlgmr.msra.gmra.mrb[16].mxu1 %vm333_vm0, %v916_v36 }
 0x341   : > { %1379 = vmatpush3.bf16.msra.mxu1 %v1072_v37  ;;  %1380 = vmatprep.mubr.msk.bf16.mxu1 %vm1550_vm1, %v1549_v0 }
 0x342   : > { %v918_v42 = vpack.c.bf16 %v913_v41, %v913_v41 }
 0x343   : > { %v905_v44 = vpop.permute.xlu1 %904 }
 0x344   : > { %1363 = vmatmul.mubr.msk.bf16.vlgmr.msra.gmra.mrb[16].mxu0 %vm333_vm0, %v918_v42  ;;  %v914_v46 = vmul.f32 %v905_v44, %v890_v45 }
 0x345   : > { %1373 = vmatpush3.bf16.msra.mxu0 %v1022_v43  ;;  %1374 = vmatprep.mubr.msk.bf16.mxu0 %vm1550_vm1, %v1549_v0 }
 0x346   : > { %v1015_v50 = vpack.c.bf16 %v914_v46, %v914_v46 }
 0x347   : > { %v910_v47 = vpop.permute.xlu0 %909 }
 0x348   : > { %v915_v49 = vmul.f32 %v910_v47, %v891_v48 }
 0x34a   : > { %v1065_v51 = vpack.c.bf16 %v915_v49, %v915_v49 }
 0x34c   : > { %1375 = vmatmul.mubr.msk.bf16.vlgmr.msra.gmra.mrb[20].mxu0 %vm333_vm0, %v1015_v50  ;;  %1381 = vmatmul.mubr.msk.bf16.vlgmr.msra.gmra.mrb[20].mxu1 %vm333_vm0, %v1065_v51 }
 0x413   : > { %v1009_v52 = vpop.f32.mrb[16].mxu1 }
 0x414   : > { %v1370_v53 = vpop.f32.mrb[17].mxu1 }
 0x415   : > { %v1012_v54 = vpop.f32.mrb[18].mxu1 }
 0x416   : > { %v1371_v55 = vpop.f32.mrb[19].mxu1 }
 0x417   : > { %v963_v56 = vpop.f32.mrb[16].mxu0 }
 0x418   : > { %v1010_v57 = vadd.f32 %v1009_v52, %v963_v56  ;;  %v1364_v58 = vpop.f32.mrb[17].mxu0 }
 0x419   : > { %v966_v0 = vpop.f32.mrb[18].mxu0 }
 0x41a   : > { %v1365_v59 = vpop.f32.mrb[19].mxu0 }
 0x41f   : > { %v1058_v60 = vpop.f32.mrb[20].mxu0  ;;  %v1108_v61 = vpop.f32.mrb[20].mxu1 }
 0x420   : > { %v1064_v62 = vadd.f32 %v1058_v60, %v1010_v57  ;;  %v1376_v63 = vpop.f32.mrb[21].mxu0  ;;  %v1382_v1 = vpop.f32.mrb[21].mxu1 }
 0x421   : > { %v1061_v3 = vpop.f32.mrb[22].mxu0  ;;  %v1111_v4 = vpop.f32.mrb[22].mxu1 }
 0x422   : > { %v1114_v5 = vadd.f32 %v1108_v61, %v1064_v62  ;;  %v1377_v6 = vpop.f32.mrb[23].mxu0  ;;  %v1383_v7 = vpop.f32.mrb[23].mxu1 }
 0x424   : > { %v1122_v8 = vadd.f32 %v1280_v2, %v1114_v5 }
 0x426   : > { %1124 = vst.msk [vmem:[%s292_s16] sm:$0xff] %vm1123_vm5, %v1122_v8 }
 0x427   : > { %1482 = shalt.err (!%p1479_p5)
}
 0x428   : > { %s1483_s10 = scalar_lea.hbm %s1845_s27, 128  ;;  %s1487_s13 = scalar_lea.hbm %s1897_s5, 256 }
 0x429   : > { %p1484_p6 = scmp.ne.s32.totalorder %s1845_s27, %s1483_s10  ;;  %p1488_p10 = scmp.lt.u32.totalorder %s1845_s27, %s1897_s5 }
 0x42a   : > { %p1489_p11 = scmp.lt.u32.totalorder %s1487_s13, %s1483_s10  ;;  %p1491_p13 = scmp.lt.u32.totalorder %s1483_s10, %s1845_s27 }
 0x42b   : > { %p1485_p7 = pnand %p1484_p6, %p1624_p4 }
 0x42c   : > { %p1490_p12 = por %p1489_p11, %p1488_p10 }
 0x42d   : > { %p1486_p9 = pneg %p1485_p7 }
 0x42e   : > { %p1492_p0 = por %p1491_p13, %p1490_p12 }
 0x430   : > { %p1493_p1 = pnand %p1492_p0, %p1486_p9 }
 0x432   : > { %1496 = shalt.err (!%p1493_p1)
}
 0x433   : > { %1384 = dma.vmem_to_hbm [thread:$0]  (%p1624_p4), %s1847_s17, 128, %s1845_s27, %s1126_s29  }
 0x434 PF: > { %p1390_p2 = scmp.ge.s32.totalorder %s1547_s23, 2  ;;  %s1152_s16 = sand.u32 1, %s1527_s18  }
 0x435   : > { %s1153_s24 = scalar_lea.sflag [#allocation6], %s1152_s16 }
 0x436   : > { %p1387_p3 = pnand %p1390_p2, %p1631_p8 }
 0x438   : > { %1522 = dma.done.wait (!%p1387_p3), %s1153_s24, 128  }
 0x439   : > { %1524 = vsyncadd (!%p1387_p3), %s1153_s24, 4294967168  ;;  %s18_s23 = sadd.s32 1, %s1547_s23   ;;  %s1900_s18 = smov %s1531_s19 }
 0x43a   : > { %p15_p5 = scmp.ge.s32.totalorder %s18_s23, 4   ;;  %s1901_s19 = smov %s1535_s20 }
 0x43b   : > { %s1902_s20 = smov %s1637_s6  ;;  %s1903_s21 = smov %s1543_s22 }
 0x43c   : > { %s1904_s22 = smov %s1906_s26  ;;  %17 = sbr.rel (!%p15_p5) target bundleno = 4 (0x4), region = 96 }
 0x443   :  { %1158 = vsyncpa [#allocation6], 1 }
 0x444   :  { %1160 = vsyncpa [#allocation6 + $0x1], 1 }

</bundles_post_ra>
